<compile_context>
chip_gen: v5e
topology: v5e:2x2
jax: 0.10.0
libtpu: 0.0.40
codegen_flags: <defaults>
</compile_context>

<pallas_src>
import functools

import jax
import jax.numpy as jnp
from jax.experimental import pallas as pl
from jax.experimental.pallas import tpu as pltpu


def _conv3_rows(src_ref, band_ref, H, Nb):
    """Sum of 3 row-shifted matmuls: out[m] = sum_dy src[m+dy] @ band[dy].

    src_ref  : (Nb, H+2, K) VMEM ref (per-image halo rows at 0 and H+1)
    band_ref : (3, K, Nout) banded (W-folded) conv weights
    Returns  : (Nb*H, Nout) f32 accumulator.
    """
    k = src_ref.shape[2]
    acc = None
    for dy in range(3):                         # static unroll: 3 MXU pushes
        lhs = src_ref[:, dy:dy + H, :].reshape(Nb * H, k)   # layout-preserving
        part = jnp.dot(lhs, band_ref[dy], preferred_element_type=jnp.float32)
        acc = part if acc is None else acc + part
    return acc


def _encoder_block_kernel(x_ref, b1_ref, b2_ref, t1_ref, t2_ref, o_ref,
                          xs_ref, p_ref, *, H, Nb):
    """Fused [conv3x3 + BN + ReLU] x 2 for Nb batch images (lane-flat rows).

    x_ref  : (Nb, H,   W*Cin)    unpadded, lane-flattened input block (bf16)
    b1_ref : (3, W*Cin,  W*Cmid) banded conv-1 weights (BN scale folded, bf16)
    b2_ref : (3, W*Cmid, W*Cout) banded conv-2 weights (BN scale folded, bf16)
    t*_ref : (1, W*C)            folded conv-bias + BatchNorm shift (f32)
    o_ref  : (Nb, H, W*Cout)     lane-dense output
    xs_ref : (Nb, H+2, W*Cin)    VMEM scratch: input with H halo (bf16)
    p_ref  : (Nb, H+2, W*Cmid)   VMEM scratch: layer-1 activation with halo
    """
    wc_in = x_ref.shape[2]
    wc_mid = p_ref.shape[2]
    wc_out = o_ref.shape[2]

    # ---- build the per-image H halo in VMEM (zero only the 2 halo rows) ----
    zin = jnp.zeros((Nb, 1, wc_in), xs_ref.dtype)
    xs_ref[:, 0:1, :] = zin
    xs_ref[:, H + 1:H + 2, :] = zin
    xs_ref[:, 1:H + 1, :] = x_ref[...].astype(xs_ref.dtype)

    # ---- layer 1: conv (W folded into band, BN scale folded into weights) --
    acc1 = _conv3_rows(xs_ref, b1_ref, H, Nb)               # (Nb*H, W*Cmid) f32
    y1 = jnp.maximum(acc1 + t1_ref[...], 0.0)

    # Stash the intermediate (with halo) in VMEM; no HBM round-trip.
    zmid = jnp.zeros((Nb, 1, wc_mid), p_ref.dtype)
    p_ref[:, 0:1, :] = zmid
    p_ref[:, H + 1:H + 2, :] = zmid
    p_ref[:, 1:H + 1, :] = y1.reshape(Nb, H, wc_mid).astype(p_ref.dtype)

    # ---- layer 2 -----------------------------------------------------------
    acc2 = _conv3_rows(p_ref, b2_ref, H, Nb)                 # (Nb*H, W*Cout) f32
    y2 = jnp.maximum(acc2 + t2_ref[...], 0.0)

    o_ref[...] = y2.reshape(Nb, H, wc_out).astype(o_ref.dtype)   # full-lane vst


def _banded_conv_weights(w, width):
    """Fold the W axis of a 3x3 'same' conv into a banded matmul weight.

    w: (3, 3, Cin, Cout) HWIO.  Returns (3, width*Cin, width*Cout); slab `dy`
    maps a lane-flat input row (width*Cin,) to a lane-flat output row
    (width*Cout,):
        B[dy][win*Cin+ci, wout*Cout+co] = w[dy, win-wout+1, ci, co]
    with zeros outside the band (this also realizes padding=1 along W).
    """
    _, _, cin, cout = w.shape
    win = jnp.arange(width)[:, None]          # input column
    wout = jnp.arange(width)[None, :]         # output column
    dx = win - wout + 1                       # conv tap index
    in_band = (dx >= 0) & (dx <= 2)
    dx_c = jnp.clip(dx, 0, 2)
    slabs = []
    for dy in range(3):
        sel = w[dy][dx_c]                                    # (W, W, Cin, Cout)
        sel = jnp.where(in_band[..., None, None], sel, 0)
        slabs.append(
            jnp.transpose(sel, (0, 2, 1, 3)).reshape(width * cin, width * cout))
    return jnp.stack(slabs)                                  # (3, W*Cin, W*Cout)


def _pick_batch_block(n, max_nb=8):
    """Largest divisor of n that is <= max_nb (batch images per grid step)."""
    for nb in range(min(n, max_nb), 0, -1):
        if n % nb == 0:
            return nb
    return 1


def encoder_block(x_nchw, params, eps=1e-5, max_batch_block=8):
    """Forward of _EncoderBlock (inference-mode BN, dropout=0). NCHW in/out."""
    (w1, b1, g1, be1, m1, v1) = params["layer1"]
    (w2, b2, g2, be2, m2, v2) = params["layer2"]
    N, Cin, H, W = x_nchw.shape
    Cmid = w1.shape[-1]
    Cout = w2.shape[-1]

    # Fold conv bias + inference BatchNorm into per-channel (scale, shift).
    def fold(bias, gamma, beta, mean, var):
        scale = gamma / jnp.sqrt(var + eps)
        shift = (bias - mean) * scale + beta
        return scale, shift

    s1, t1 = fold(b1, g1, be1, m1, v1)
    s2, t2 = fold(b2, g2, be2, m2, v2)

    # BN scale folded into the conv weights (per output channel), then the W
    # axis folded into banded Toeplitz slabs; bf16 operands for the MXU.
    bw1 = _banded_conv_weights(w1 * s1, W).astype(jnp.bfloat16)   # (3,W*Cin, W*Cmid)
    bw2 = _banded_conv_weights(w2 * s2, W).astype(jnp.bfloat16)   # (3,W*Cmid,W*Cout)

    # Shift tiled across W so it applies directly to the lane-flat (W*C) rows.
    t1_flat = jnp.tile(t1, W).reshape(1, W * Cmid).astype(jnp.float32)
    t2_flat = jnp.tile(t2, W).reshape(1, W * Cout).astype(jnp.float32)

    # NCHW -> lane-flat (N, H, W*Cin), bf16.  No wrapper-side H padding; the
    # halo is built inside the kernel.
    # TODO(synk): in an NHWC end-to-end model these boundary transposes vanish.
    x_flat = jnp.transpose(x_nchw, (0, 2, 3, 1)).reshape(N, H, W * Cin)
    x_flat = x_flat.astype(jnp.bfloat16)

    Nb = _pick_batch_block(N, max_batch_block)
    grid = (N // Nb,)

    kernel = functools.partial(_encoder_block_kernel, H=H, Nb=Nb)

    out_flat = pl.pallas_call(
        kernel,
        out_shape=jax.ShapeDtypeStruct((N, H, W * Cout), x_nchw.dtype),
        grid_spec=pltpu.PrefetchScalarGridSpec(
            num_scalar_prefetch=0,
            grid=grid,
            in_specs=[
                pl.BlockSpec((Nb, H, W * Cin), lambda n: (n, 0, 0)),
                # Grid-invariant weight/shift blocks (index 0 every step).
                pl.BlockSpec((3, W * Cin, W * Cmid), lambda n: (0, 0, 0)),
                pl.BlockSpec((3, W * Cmid, W * Cout), lambda n: (0, 0, 0)),
                pl.BlockSpec((1, W * Cmid), lambda n: (0, 0)),
                pl.BlockSpec((1, W * Cout), lambda n: (0, 0)),
            ],
            out_specs=pl.BlockSpec((Nb, H, W * Cout), lambda n: (n, 0, 0)),
            scratch_shapes=[
                pltpu.VMEM((Nb, H + 2, W * Cin), jnp.bfloat16),   # input + halo
                pltpu.VMEM((Nb, H + 2, W * Cmid), jnp.bfloat16),  # layer-1 act
            ],
        ),
        compiler_params=pltpu.CompilerParams(
            dimension_semantics=("parallel",)),
    )(x_flat, bw1, bw2, t1_flat, t2_flat)

    return jnp.transpose(out_flat.reshape(N, H, W, Cout), (0, 3, 1, 2))


def _reference_conv_bn_relu(x_nhwc, w, b, gamma, beta, rmean, rvar, eps=1e-5):
    y = jax.lax.conv_general_dilated(
        x_nhwc, w, window_strides=(1, 1), padding="SAME",
        dimension_numbers=("NHWC", "HWIO", "NHWC"),
    ) + b
    y = (y - rmean) / jnp.sqrt(rvar + eps) * gamma + beta
    return jnp.maximum(y, 0.0)


if __name__ == "__main__":
    N, Cin, H, W = 2, 4, 16, 16
    Cout = 8                                   # W*Cout = 128 -> lane-dense

    key = jax.random.PRNGKey(0)
    kx, kw1, kb1, kw2, kb2 = jax.random.split(key, 5)

    x_nchw = jax.random.normal(kx, (N, Cin, H, W), dtype=jnp.float32)

    # Deterministic parameter init (shapes match nn.Conv2d / nn.BatchNorm2d).
    w1 = jax.random.normal(kw1, (3, 3, Cin, Cout), jnp.float32) * 0.1   # HWIO
    b1 = jax.random.normal(kb1, (Cout,), jnp.float32) * 0.1
    w2 = jax.random.normal(kw2, (3, 3, Cout, Cout), jnp.float32) * 0.1
    b2 = jax.random.normal(kb2, (Cout,), jnp.float32) * 0.1

    bn1 = (jnp.ones((Cout,)), jnp.zeros((Cout,)),      # gamma, beta
           jnp.zeros((Cout,)), jnp.ones((Cout,)))      # running_mean, running_var
    bn2 = (jnp.ones((Cout,)), jnp.zeros((Cout,)),
           jnp.zeros((Cout,)), jnp.ones((Cout,)))

    params = {
        "layer1": (w1, b1) + bn1,
        "layer2": (w2, b2) + bn2,
    }

    out = encoder_block(x_nchw, params)
    out = jax.block_until_ready(out)
    assert out.shape == (N, Cout, H, W), out.shape

    # Correctness check against a plain-JAX f32 reference (kernel uses bf16
    # matmul operands, so the tolerance is bf16-appropriate).
    x_nhwc = jnp.transpose(x_nchw, (0, 2, 3, 1))
    ref = _reference_conv_bn_relu(x_nhwc, *params["layer1"])
    ref = _reference_conv_bn_relu(ref, *params["layer2"])
    ref = jnp.transpose(ref, (0, 3, 1, 2))
    max_err = float(jnp.max(jnp.abs(out - ref)))
    assert jnp.allclose(out, ref, atol=3e-2, rtol=3e-2), max_err

    print("KERNEL_OK")
</pallas_src>

<mosaic_0001>
module attributes {stable_mosaic.version = 11 : i64} {
  func.func @_encoder_block_kernel(%arg0: i32, %arg1: memref<2x16x64xbf16, #tpu.memory_space<vmem>>, %arg2: memref<3x64x128xbf16, #tpu.memory_space<vmem>>, %arg3: memref<3x128x128xbf16, #tpu.memory_space<vmem>>, %arg4: memref<1x128xf32, #tpu.memory_space<vmem>>, %arg5: memref<1x128xf32, #tpu.memory_space<vmem>>, %arg6: memref<2x16x128xf32, #tpu.memory_space<vmem>>, %arg7: memref<2x18x64xbf16, #tpu.memory_space<vmem>>, %arg8: memref<2x18x128xbf16, #tpu.memory_space<vmem>>) attributes {dimension_semantics = [#tpu.dimension_semantics<parallel>], iteration_bounds = array<i64: 1>, scalar_prefetch = 0 : i64, scratch_operands = 2 : i64, tpu.core_type = #tpu.core_type<tc>, window_params = [{transform_indices = @transform_0, window_bounds = array<i64: 2, 16, 64>}, {pipeline_mode = #tpu.pipeline_mode<synchronous>, transform_indices = @transform_1, window_bounds = array<i64: 3, 64, 128>}, {pipeline_mode = #tpu.pipeline_mode<synchronous>, transform_indices = @transform_2, window_bounds = array<i64: 3, 128, 128>}, {pipeline_mode = #tpu.pipeline_mode<synchronous>, transform_indices = @transform_3, window_bounds = array<i64: 1, 128>}, {pipeline_mode = #tpu.pipeline_mode<synchronous>, transform_indices = @transform_4, window_bounds = array<i64: 1, 128>}, {transform_indices = @transform_5, window_bounds = array<i64: 2, 16, 128>}]} {
    %cst = arith.constant 0.000000e+00 : bf16
    %0 = vector.broadcast %cst : bf16 to vector<2x1x64xbf16>
    %c0 = arith.constant 0 : index
    %c0_0 = arith.constant 0 : index
    %c0_1 = arith.constant 0 : index
    %1 = vector.load %arg7[%c0, %c0_0, %c0_1] : memref<2x18x64xbf16, #tpu.memory_space<vmem>>, vector<2x1x64xbf16>
    tpu.vector_store %arg7[%c0, %c0_0, %c0_1], %0 {strides = array<i32>} : memref<2x18x64xbf16, #tpu.memory_space<vmem>>, vector<2x1x64xbf16>,
    %c0_2 = arith.constant 0 : index
    %c17 = arith.constant 17 : index
    %c0_3 = arith.constant 0 : index
    %2 = vector.load %arg7[%c0_2, %c17, %c0_3] : memref<2x18x64xbf16, #tpu.memory_space<vmem>>, vector<2x1x64xbf16>
    tpu.vector_store %arg7[%c0_2, %c17, %c0_3], %0 {strides = array<i32>} : memref<2x18x64xbf16, #tpu.memory_space<vmem>>, vector<2x1x64xbf16>,
    %c0_4 = arith.constant 0 : index
    %c0_5 = arith.constant 0 : index
    %c0_6 = arith.constant 0 : index
    %3 = vector.load %arg1[%c0_4, %c0_5, %c0_6] : memref<2x16x64xbf16, #tpu.memory_space<vmem>>, vector<2x16x64xbf16>
    %c0_7 = arith.constant 0 : index
    %c1 = arith.constant 1 : index
    %c0_8 = arith.constant 0 : index
    %4 = vector.load %arg7[%c0_7, %c1, %c0_8] : memref<2x18x64xbf16, #tpu.memory_space<vmem>>, vector<2x16x64xbf16>
    tpu.vector_store %arg7[%c0_7, %c1, %c0_8], %3 {strides = array<i32>} : memref<2x18x64xbf16, #tpu.memory_space<vmem>>, vector<2x16x64xbf16>,
    %c0_9 = arith.constant 0 : index
    %c0_10 = arith.constant 0 : index
    %c0_11 = arith.constant 0 : index
    %5 = vector.load %arg7[%c0_9, %c0_10, %c0_11] : memref<2x18x64xbf16, #tpu.memory_space<vmem>>, vector<2x16x64xbf16>
    %6 = vector.shape_cast %5 : vector<2x16x64xbf16> to vector<32x64xbf16>
    %c0_12 = arith.constant 0 : index
    %c0_13 = arith.constant 0 : index
    %c0_14 = arith.constant 0 : index
    %7 = vector.load %arg2[%c0_12, %c0_13, %c0_14] : memref<3x64x128xbf16, #tpu.memory_space<vmem>>, vector<1x64x128xbf16>
    %8 = vector.shape_cast %7 : vector<1x64x128xbf16> to vector<64x128xbf16>
    %cst_15 = arith.constant dense<0.000000e+00> : vector<32x128xf32>
    %9 = tpu.matmul %6, %8, %cst_15 {dimension_numbers = #tpu.dot_dimension_numbers<[1], [0], [0], [1], [0, 0, 1, 1], [], []>} : vector<32x64xbf16>, vector<64x128xbf16>, vector<32x128xf32> -> vector<32x128xf32>
    %c0_16 = arith.constant 0 : index
    %c1_17 = arith.constant 1 : index
    %c0_18 = arith.constant 0 : index
    %10 = vector.load %arg7[%c0_16, %c1_17, %c0_18] : memref<2x18x64xbf16, #tpu.memory_space<vmem>>, vector<2x16x64xbf16>
    %11 = vector.shape_cast %10 : vector<2x16x64xbf16> to vector<32x64xbf16>
    %c1_19 = arith.constant 1 : index
    %c0_20 = arith.constant 0 : index
    %c0_21 = arith.constant 0 : index
    %12 = vector.load %arg2[%c1_19, %c0_20, %c0_21] : memref<3x64x128xbf16, #tpu.memory_space<vmem>>, vector<1x64x128xbf16>
    %13 = vector.shape_cast %12 : vector<1x64x128xbf16> to vector<64x128xbf16>
    %cst_22 = arith.constant dense<0.000000e+00> : vector<32x128xf32>
    %14 = tpu.matmul %11, %13, %cst_22 {dimension_numbers = #tpu.dot_dimension_numbers<[1], [0], [0], [1], [0, 0, 1, 1], [], []>} : vector<32x64xbf16>, vector<64x128xbf16>, vector<32x128xf32> -> vector<32x128xf32>
    %15 = arith.addf %9, %14 : vector<32x128xf32>
    %c0_23 = arith.constant 0 : index
    %c2 = arith.constant 2 : index
    %c0_24 = arith.constant 0 : index
    %16 = vector.load %arg7[%c0_23, %c2, %c0_24] : memref<2x18x64xbf16, #tpu.memory_space<vmem>>, vector<2x16x64xbf16>
    %17 = vector.shape_cast %16 : vector<2x16x64xbf16> to vector<32x64xbf16>
    %c2_25 = arith.constant 2 : index
    %c0_26 = arith.constant 0 : index
    %c0_27 = arith.constant 0 : index
    %18 = vector.load %arg2[%c2_25, %c0_26, %c0_27] : memref<3x64x128xbf16, #tpu.memory_space<vmem>>, vector<1x64x128xbf16>
    %19 = vector.shape_cast %18 : vector<1x64x128xbf16> to vector<64x128xbf16>
    %cst_28 = arith.constant dense<0.000000e+00> : vector<32x128xf32>
    %20 = tpu.matmul %17, %19, %cst_28 {dimension_numbers = #tpu.dot_dimension_numbers<[1], [0], [0], [1], [0, 0, 1, 1], [], []>} : vector<32x64xbf16>, vector<64x128xbf16>, vector<32x128xf32> -> vector<32x128xf32>
    %21 = arith.addf %15, %20 : vector<32x128xf32>
    %c0_29 = arith.constant 0 : index
    %c0_30 = arith.constant 0 : index
    %22 = vector.load %arg4[%c0_29, %c0_30] : memref<1x128xf32, #tpu.memory_space<vmem>>, vector<1x128xf32>
    %23 = vector.broadcast %22 : vector<1x128xf32> to vector<32x128xf32>
    %24 = arith.addf %21, %23 : vector<32x128xf32>
    %cst_31 = arith.constant 0.000000e+00 : f32
    %25 = vector.broadcast %cst_31 : f32 to vector<32x128xf32>
    %26 = arith.maximumf %24, %25 : vector<32x128xf32>
    %cst_32 = arith.constant 0.000000e+00 : bf16
    %27 = vector.broadcast %cst_32 : bf16 to vector<2x1x128xbf16>
    %c0_33 = arith.constant 0 : index
    %c0_34 = arith.constant 0 : index
    %c0_35 = arith.constant 0 : index
    %28 = vector.load %arg8[%c0_33, %c0_34, %c0_35] : memref<2x18x128xbf16, #tpu.memory_space<vmem>>, vector<2x1x128xbf16>
    tpu.vector_store %arg8[%c0_33, %c0_34, %c0_35], %27 {strides = array<i32>} : memref<2x18x128xbf16, #tpu.memory_space<vmem>>, vector<2x1x128xbf16>,
    %c0_36 = arith.constant 0 : index
    %c17_37 = arith.constant 17 : index
    %c0_38 = arith.constant 0 : index
    %29 = vector.load %arg8[%c0_36, %c17_37, %c0_38] : memref<2x18x128xbf16, #tpu.memory_space<vmem>>, vector<2x1x128xbf16>
    tpu.vector_store %arg8[%c0_36, %c17_37, %c0_38], %27 {strides = array<i32>} : memref<2x18x128xbf16, #tpu.memory_space<vmem>>, vector<2x1x128xbf16>,
    %30 = vector.shape_cast %26 : vector<32x128xf32> to vector<2x16x128xf32>
    %31 = arith.truncf %30 : vector<2x16x128xf32> to vector<2x16x128xbf16>
    %c0_39 = arith.constant 0 : index
    %c1_40 = arith.constant 1 : index
    %c0_41 = arith.constant 0 : index
    %32 = vector.load %arg8[%c0_39, %c1_40, %c0_41] : memref<2x18x128xbf16, #tpu.memory_space<vmem>>, vector<2x16x128xbf16>
    tpu.vector_store %arg8[%c0_39, %c1_40, %c0_41], %31 {strides = array<i32>} : memref<2x18x128xbf16, #tpu.memory_space<vmem>>, vector<2x16x128xbf16>,
    %c0_42 = arith.constant 0 : index
    %c0_43 = arith.constant 0 : index
    %c0_44 = arith.constant 0 : index
    %33 = vector.load %arg8[%c0_42, %c0_43, %c0_44] : memref<2x18x128xbf16, #tpu.memory_space<vmem>>, vector<2x16x128xbf16>
    %34 = vector.shape_cast %33 : vector<2x16x128xbf16> to vector<32x128xbf16>
    %c0_45 = arith.constant 0 : index
    %c0_46 = arith.constant 0 : index
    %c0_47 = arith.constant 0 : index
    %35 = vector.load %arg3[%c0_45, %c0_46, %c0_47] : memref<3x128x128xbf16, #tpu.memory_space<vmem>>, vector<1x128x128xbf16>
    %36 = vector.shape_cast %35 : vector<1x128x128xbf16> to vector<128x128xbf16>
    %cst_48 = arith.constant dense<0.000000e+00> : vector<32x128xf32>
    %37 = tpu.matmul %34, %36, %cst_48 {dimension_numbers = #tpu.dot_dimension_numbers<[1], [0], [0], [1], [0, 0, 1, 1], [], []>} : vector<32x128xbf16>, vector<128x128xbf16>, vector<32x128xf32> -> vector<32x128xf32>
    %c0_49 = arith.constant 0 : index
    %c1_50 = arith.constant 1 : index
    %c0_51 = arith.constant 0 : index
    %38 = vector.load %arg8[%c0_49, %c1_50, %c0_51] : memref<2x18x128xbf16, #tpu.memory_space<vmem>>, vector<2x16x128xbf16>
    %39 = vector.shape_cast %38 : vector<2x16x128xbf16> to vector<32x128xbf16>
    %c1_52 = arith.constant 1 : index
    %c0_53 = arith.constant 0 : index
    %c0_54 = arith.constant 0 : index
    %40 = vector.load %arg3[%c1_52, %c0_53, %c0_54] : memref<3x128x128xbf16, #tpu.memory_space<vmem>>, vector<1x128x128xbf16>
    %41 = vector.shape_cast %40 : vector<1x128x128xbf16> to vector<128x128xbf16>
    %cst_55 = arith.constant dense<0.000000e+00> : vector<32x128xf32>
    %42 = tpu.matmul %39, %41, %cst_55 {dimension_numbers = #tpu.dot_dimension_numbers<[1], [0], [0], [1], [0, 0, 1, 1], [], []>} : vector<32x128xbf16>, vector<128x128xbf16>, vector<32x128xf32> -> vector<32x128xf32>
    %43 = arith.addf %37, %42 : vector<32x128xf32>
    %c0_56 = arith.constant 0 : index
    %c2_57 = arith.constant 2 : index
    %c0_58 = arith.constant 0 : index
    %44 = vector.load %arg8[%c0_56, %c2_57, %c0_58] : memref<2x18x128xbf16, #tpu.memory_space<vmem>>, vector<2x16x128xbf16>
    %45 = vector.shape_cast %44 : vector<2x16x128xbf16> to vector<32x128xbf16>
    %c2_59 = arith.constant 2 : index
    %c0_60 = arith.constant 0 : index
    %c0_61 = arith.constant 0 : index
    %46 = vector.load %arg3[%c2_59, %c0_60, %c0_61] : memref<3x128x128xbf16, #tpu.memory_space<vmem>>, vector<1x128x128xbf16>
    %47 = vector.shape_cast %46 : vector<1x128x128xbf16> to vector<128x128xbf16>
    %cst_62 = arith.constant dense<0.000000e+00> : vector<32x128xf32>
    %48 = tpu.matmul %45, %47, %cst_62 {dimension_numbers = #tpu.dot_dimension_numbers<[1], [0], [0], [1], [0, 0, 1, 1], [], []>} : vector<32x128xbf16>, vector<128x128xbf16>, vector<32x128xf32> -> vector<32x128xf32>
    %49 = arith.addf %43, %48 : vector<32x128xf32>
    %c0_63 = arith.constant 0 : index
    %c0_64 = arith.constant 0 : index
    %50 = vector.load %arg5[%c0_63, %c0_64] : memref<1x128xf32, #tpu.memory_space<vmem>>, vector<1x128xf32>
    %51 = vector.broadcast %50 : vector<1x128xf32> to vector<32x128xf32>
    %52 = arith.addf %49, %51 : vector<32x128xf32>
    %cst_65 = arith.constant 0.000000e+00 : f32
    %53 = vector.broadcast %cst_65 : f32 to vector<32x128xf32>
    %54 = arith.maximumf %52, %53 : vector<32x128xf32>
    %55 = vector.shape_cast %54 : vector<32x128xf32> to vector<2x16x128xf32>
    %c0_66 = arith.constant 0 : index
    %c0_67 = arith.constant 0 : index
    %c0_68 = arith.constant 0 : index
    %56 = vector.load %arg6[%c0_66, %c0_67, %c0_68] : memref<2x16x128xf32, #tpu.memory_space<vmem>>, vector<2x16x128xf32>
    tpu.vector_store %arg6[%c0_66, %c0_67, %c0_68], %55 {strides = array<i32>} : memref<2x16x128xf32, #tpu.memory_space<vmem>>, vector<2x16x128xf32>,
    return
  }
  func.func @transform_0(%arg0: i32) -> (i32, i32, i32) {
    %c0_i32 = arith.constant 0 : i32
    %c0_i32_0 = arith.constant 0 : i32
    %c0_i32_1 = arith.constant 0 : i32
    return %arg0, %c0_i32, %c0_i32_0 : i32, i32, i32
  }
  func.func @transform_1(%arg0: i32) -> (i32, i32, i32) {
    %c0_i32 = arith.constant 0 : i32
    %c0_i32_0 = arith.constant 0 : i32
    %c0_i32_1 = arith.constant 0 : i32
    %c0_i32_2 = arith.constant 0 : i32
    return %c0_i32, %c0_i32_0, %c0_i32_1 : i32, i32, i32
  }
  func.func @transform_2(%arg0: i32) -> (i32, i32, i32) {
    %c0_i32 = arith.constant 0 : i32
    %c0_i32_0 = arith.constant 0 : i32
    %c0_i32_1 = arith.constant 0 : i32
    %c0_i32_2 = arith.constant 0 : i32
    return %c0_i32, %c0_i32_0, %c0_i32_1 : i32, i32, i32
  }
  func.func @transform_3(%arg0: i32) -> (i32, i32) {
    %c0_i32 = arith.constant 0 : i32
    %c0_i32_0 = arith.constant 0 : i32
    %c0_i32_1 = arith.constant 0 : i32
    return %c0_i32, %c0_i32_0 : i32, i32
  }
  func.func @transform_4(%arg0: i32) -> (i32, i32) {
    %c0_i32 = arith.constant 0 : i32
    %c0_i32_0 = arith.constant 0 : i32
    %c0_i32_1 = arith.constant 0 : i32
    return %c0_i32, %c0_i32_0 : i32, i32
  }
  func.func @transform_5(%arg0: i32) -> (i32, i32, i32) {
    %c0_i32 = arith.constant 0 : i32
    %c0_i32_0 = arith.constant 0 : i32
    %c0_i32_1 = arith.constant 0 : i32
    return %arg0, %c0_i32, %c0_i32_0 : i32, i32, i32
  }
}

</mosaic_0001>

<bundles_post_ra>
// kernel: tpu_custom_call.1
= control target key start
LH: loop header
LB: loop body
LE: loop exit
PB: predicated region body
PF: predicated region fallthrough
CT: control target
= control target key end

     0   :  { %10 = vsyncpa [#allocation5], 0  ;;  %s1429_s0 = inlined_call_operand.hbm [shape: bf16[2,16,64], index: 0, kind: input, shape index: {}]   ;;  %s1430_s1 = inlined_call_operand.hbm [shape: bf16[3,64,128], index: 1, kind: input, shape index: {}]   ;;  %s1431_s2 = inlined_call_operand.hbm [shape: bf16[3,128,128], index: 2, kind: input, shape index: {}]   ;;  %s1432_s3 = inlined_call_operand.vmem [shape: f32[1,128], index: 3, kind: input, shape index: {}]   ;;  %s1433_s4 = inlined_call_operand.vmem [shape: f32[1,128], index: 4, kind: input, shape index: {}]   ;;  %s1434_s5 = inlined_call_operand.hbm [shape: f32[2,16,128], index: 5, kind: output, shape index: {}]  }
   0x1   :  { %11 = vsyncpa [#allocation8], 0 }
   0x2   :  { %12 = vsyncpa [#allocation6], 0  ;;  %s30_s20 = sshll.u32 %s1430_s1, 4  ;;  %s1239_s21 = smov [#allocation7]   ;;  %s31_s20 = int_to_ptr.hbm [resolvable:$true] %s30_s20 }
   0x3   :  { %s32_s22 = sshll.u32 %s1239_s21, 4  ;;  %s17_s25 = sshll.u32 %s1429_s0, 4  ;;  %s33_s22 = int_to_ptr.vmem [resolvable:$true] %s32_s22  ;;  %s18_s25 = int_to_ptr.hbm [resolvable:$true] %s17_s25 }
   0x4   :  { %s1240_s26 = smov 64   ;;  %s1241_s27 = smov 4  }
   0x5   :  { %38 = dma.hbm_to_vmem [thread:$0]  %s31_s20, 1536, %s33_s22, [#allocation8], %s1240_s26, %s1240_s26, %s1241_s27  }
   0x6   :  { %s1242_s28 = smov [#allocation4]   ;;  %s43_s7 = sshll.u32 %s1431_s2, 4  ;;  %s44_s7 = int_to_ptr.hbm [resolvable:$true] %s43_s7 }
   0x7   :  { %s19_s29 = sshll.u32 %s1242_s28, 4  ;;  %s1243_s1 = smov [#allocation9]   ;;  %s20_s29 = int_to_ptr.vmem [resolvable:$true] %s19_s29 }
   0x8   :  { %25 = dma.hbm_to_vmem [thread:$0]  %s18_s25, 256, %s20_s29, [#allocation5], %s1240_s26, %s1240_s26, %s1241_s27  }
   0x9   :  { %s45_s8 = sshll.u32 %s1243_s1, 4  ;;  %s46_s8 = int_to_ptr.vmem [resolvable:$true] %s45_s8 }
   0xa   :  { %51 = dma.hbm_to_vmem [thread:$0]  %s44_s7, 3072, %s46_s8, [#allocation8], %s1240_s26, %s1240_s26, %s1241_s27  }
   0xb   :  { %1233 = dma.done.wait [#allocation5], 256  }
   0xc   :  { %1234 = vsyncadd [#allocation5], 4294967040 }
   0xd   :  { %1235 = dma.done.wait [#allocation8], 4608  }
   0xe   :  { %1236 = vsyncadd [#allocation8], 4294962688  ;;  %vm69_vm0 = vcmask 516096   ;;  %vm70_vm1 = vsmask.f32 256  ;;  %v1084_v0 = vld [vmem:[#allocation7 + $0x18] sm:$0xff] }
   0xf   :  { %vm78_vm2 = vsmask.f32 7938  ;;  %v1092_v1 = vld [vmem:[#allocation7 + $0x58] sm:$0xff]  ;;  %vm1287_vm3 = vmand %vm69_vm0, %vm70_vm1  ;;  %323 = vmatpush.bf16.msra.mxu1 %v1084_v0  ;;  %v1083_v4 = vld [vmem:[#allocation7 + $0x10] sm:$0xff]  ;;  %vm90_vm5 = vsmask.f32 4368 }
  0x10   :  { %v1088_v2 = vld [vmem:[#allocation7 + $0x38] sm:$0xff]  ;;  %410 = vmatpush.bf16.msra.mxu2 %v1092_v1  ;;  %v1091_v5 = vld [vmem:[#allocation7 + $0x50] sm:$0xff]  ;;  %vm1292_vm4 = vmand %vm69_vm0, %vm78_vm2  ;;  %vm132_vm6 = vcmask 519168   ;;  %vm344_vm9 = vcmask 1042432   ;;  %vm345_vm10 = vcmask 1046532   ;;  %vm253_vm12 = vcmask 523264  }
  0x11   :  { %264 = vmatpush.bf16.msra.mxu0 %v1088_v2  ;;  %v1087_v7 = vld [vmem:[#allocation7 + $0x30] sm:$0xff]  ;;  %v72_v8 = vld [vmem:[#allocation2] sm:$0x1]  ;;  %v1082_v10 = vld [vmem:[#allocation7 + $0x8] sm:$0xff]  ;;  %vm163_vm11 = vsmask.f32 3328 }
  0x12   :  { %v86_v9 = vld [vmem:[#allocation4] sm:$0xf]  ;;  %v73_v11 = vsel %vm1287_vm3, 0, %v72_v8  ;;  %v87_v12 = vld [vmem:[#allocation4 + $0x4] sm:$0xf]  ;;  %v1090_v18 = vld [vmem:[#allocation7 + $0x48] sm:$0xff] }
  0x13   :  { %v93_v13 = vshrl.u32 %v86_v9, 16  ;;  %v96_v14 = vshll.u32 %v86_v9, 16  ;;  %74 = vst [vmem:[#allocation2] sm:$0x1] %v73_v11  ;;  %v101_v15 = vshrl.u32 %v87_v12, 16  ;;  %v104_v16 = vshll.u32 %v87_v12, 16  ;;  %324 = vmatpush.bf16.msra.mxu1 %v1083_v4  ;;  %vm1304_vm7 = vmor %vm70_vm1, %vm90_vm5 }
  0x14   :  { %v80_v17 = vld [vmem:[#allocation2 + $0x8] sm:$0x1]  ;;  %411 = vmatpush.bf16.msra.mxu2 %v1091_v5  ;;  %v75_v22 = vld [vmem:[#allocation2 + $0xc] sm:$0x1]  ;;  %v88_v25 = vld [vmem:[#allocation4 + $0x8] sm:$0xf] }
  0x15   :  { %v95_v19 = vrot.slane %v93_v13, 7  ;;  %v1086_v20 = vld [vmem:[#allocation7 + $0x28] sm:$0xff]  ;;  %v81_v21 = vsel %vm1292_vm4, 0, %v80_v17  ;;  %265 = vmatpush.bf16.msra.mxu0 %v1087_v7  ;;  %v103_v23 = vrot.slane %v101_v15, 7  ;;  %v76_v24 = vsel %vm1287_vm3, 0, %v75_v22  ;;  %v1081_v30 = vld [vmem:[#allocation7] sm:$0xff]  ;;  %vm1310_vm8 = vmand %vm132_vm6, %vm78_vm2 }
  0x16   :  { %82 = vst [vmem:[#allocation2 + $0x8] sm:$0x1] %v81_v21  ;;  %v89_v28 = vld [vmem:[#allocation4 + $0xc] sm:$0xf]  ;;  %v110_v29 = vshrl.u32 %v88_v25, 16  ;;  %v1089_v31 = vld [vmem:[#allocation7 + $0x40] sm:$0xff]  ;;  %vm1330_vm13 = vmor %vm344_vm9, %vm345_vm10 }
  0x17   :  { %v99_v27 = vrot.slane %v95_v19, 4  ;;  %77 = vst [vmem:[#allocation2 + $0xc] sm:$0x1] %v76_v24  ;;  %v98_v32 = vor.u32 %v96_v14, %v95_v19  ;;  %v106_v33 = vor.u32 %v104_v16, %v103_v23  ;;  %v113_v34 = vshll.u32 %v88_v25, 16  ;;  %v83_v36 = vld [vmem:[#allocation2 + $0x14] sm:$0x1]  ;;  %325 = vmatpush.bf16.msra.mxu1 %v1082_v10 }
  0x18   :  { %v118_v35 = vshrl.u32 %v89_v28, 16  ;;  %412 = vmatpush.bf16.msra.mxu2 %v1090_v18  ;;  %v1085_v38 = vld [vmem:[#allocation7 + $0x20] sm:$0xff]  ;;  %v112_v39 = vrot.slane %v110_v29, 7  ;;  %v121_v40 = vshll.u32 %v89_v28, 16  ;;  %v84_v41 = vsel %vm1292_vm4, 0, %v83_v36  ;;  %s895_s13 = sshll.u32 %s1434_s5, 4  ;;  %s896_s13 = int_to_ptr.hbm [resolvable:$true] %s895_s13 }
  0x19   :  { %v107_v42 = vsel %vm1304_vm7, %v99_v27, %v106_v33  ;;  %v108_v43 = vrot.slane %v103_v23, 4  ;;  %266 = vmatpush.bf16.msra.mxu0 %v1086_v20  ;;  %85 = vst [vmem:[#allocation2 + $0x14] sm:$0x1] %v84_v41  ;;  %vm164_vm14 = vsmask.f32 7440  ;;  %vm441_vm0 = vcmask 1040384  }
  0x1a   :  { %v120_v44 = vrot.slane %v118_v35, 7  ;;  %v134_v45 = vld [vmem:[#allocation2] sm:$0xf]  ;;  %138 = vst.msk [vmem:[#allocation2 + $0x4] sm:$0xf] %vm132_vm6, %v107_v42  ;;  %v115_v46 = vor.u32 %v113_v34, %v112_v39  ;;  %v116_v47 = vrot.slane %v112_v39, 4  ;;  %vm1340_vm15 = vmor %vm163_vm11, %vm164_vm14 }
  0x1b   :  { %v135_v48 = vsel %vm1310_vm8, %v98_v32, %v134_v45  ;;  %326 = vmatpush.bf16.msra.mxu1 %v1081_v30  ;;  %vm500_vm4 = vcmask 1043456   ;;  %s1245_s14 = smov 128   ;;  %s1246_s15 = smov 8  }
  0x1c   :  { %v123_v49 = vor.u32 %v121_v40, %v120_v44  ;;  %413 = vmatpush.bf16.msra.mxu2 %v1089_v31  ;;  %136 = vst [vmem:[#allocation2] sm:$0xf] %v135_v48  ;;  %v125_v53 = vrot.slane %v120_v44, 4  ;;  %vm1389_vm5 = vmand %vm500_vm4, %vm78_vm2 }
  0x1d   :  { %v139_v50 = vld [vmem:[#allocation2 + $0x8] sm:$0x1]  ;;  %267 = vmatpush.bf16.msra.mxu0 %v1085_v38 }
  0x1e   :  { %v140_v51 = vsel %vm1287_vm3, %v108_v43, %v139_v50  ;;  %v124_v52 = vsel %vm1304_vm7, %v116_v47, %v123_v49  ;;  %v142_v54 = vld [vmem:[#allocation2 + $0xc] sm:$0xf] }
  0x1f   :  { %141 = vst [vmem:[#allocation2 + $0x8] sm:$0x1] %v140_v51  ;;  %v143_v55 = vsel %vm1310_vm8, %v115_v46, %v142_v54 }
  0x20   :  { %144 = vst [vmem:[#allocation2 + $0xc] sm:$0xf] %v143_v55  ;;  %v146_v56 = vld [vmem:[#allocation2 + $0x14] sm:$0x1] }
  0x21   :  { %145 = vst.msk [vmem:[#allocation2 + $0x10] sm:$0xf] %vm132_vm6, %v124_v52  ;;  %v150_v57 = vld [vmem:[#allocation2 + $0x4] sm:$0xf]  ;;  %v147_v58 = vsel %vm1287_vm3, %v125_v53, %v146_v56  ;;  %vm1363_vm3 = vmand %vm441_vm0, %vm70_vm1 }
  0x22   :  { %v349_v60 = vrot.slane %v150_v57, 5  ;;  %v176_v61 = vshll.u32 %v150_v57, 16  ;;  %v180_v62 = vshrl.u32 %v150_v57, 16  ;;  %148 = vst [vmem:[#allocation2 + $0x14] sm:$0x1] %v147_v58  ;;  %vm1371_vm1 = vmand %vm441_vm0, %vm78_vm2 }
  0x23   :  { %v1079_v63 = vld [vmem:[#allocation2] sm:$0xff] }
  0x24   :  { %v338_v0 = vld [vmem:[#allocation2] sm:$0xe]  ;;  %v351_v4 = vrot.slane %v349_v60, 4  ;;  %951 = vmatmul.msk.bf16.vlgmr.msra.gmra.mxu1 %vm253_vm12, %v1079_v63  ;;  %v178_v7 = vrot.slane %v176_v61, 5  ;;  %v182_v8 = vrot.slane %v180_v62, 4 }
  0x25   :  { %v149_v1 = vld [vmem:[#allocation2] sm:$0xf]  ;;  %v953_v2 = vrot.slane %v338_v0, 9  ;;  %v1102_v0 = vld [vmem:[#allocation9 + $0x38] sm:$0xff] }
  0x26   :  { %v167_v5 = vshrl.u32 %v149_v1, 16  ;;  %v170_v6 = vshll.u32 %v149_v1, 16  ;;  %v161_v3 = vld [vmem:[#allocation2 + $0x8] sm:$0x1]  ;;  %v183_v14 = vor.u32 %v182_v8, %v178_v7  ;;  %738 = vmatpush.bf16.msrb.mxu0 %v1102_v0  ;;  %1119 = vmatpush.bf16.msrb.mxu2 %v1102_v0  ;;  %v443_v1 = vld [vmem:[#allocation3] sm:$0x1] }
  0x27   :  { %v350_v9 = vsel %vm1330_vm13, %v953_v2, %v349_v60  ;;  %v352_v10 = vrot.slane %v161_v3, 5  ;;  %v186_v15 = vshll.u32 %v161_v3, 16  ;;  %v151_v20 = vld [vmem:[#allocation2 + $0xc] sm:$0xf]  ;;  %v1117_v8 = vld [vmem:[#allocation9 + $0xb0] sm:$0xff] }
  0x28   :  { %v169_v11 = vrot.slane %v167_v5, 4  ;;  %v172_v12 = vrot.slane %v170_v6, 5  ;;  %v370_v13 = vunpack.c.l.b16 %v350_v9  ;;  %v152_v16 = vld [vmem:[#allocation2 + $0x10] sm:$0xf]  ;;  %v184_v23 = vrot.slane %v183_v14, 4  ;;  %v1118_v6 = vld [vmem:[#allocation9 + $0xb8] sm:$0xff] }
  0x29   :  { %v353_v17 = vsel %vm1330_vm13, %v351_v4, %v352_v10  ;;  %v200_v21 = vshll.u32 %v152_v16, 16  ;;  %v188_v24 = vrot.slane %v186_v15, 5  ;;  %v191_v25 = vshrl.u32 %v151_v20, 16  ;;  %v339_v28 = vld [vmem:[#allocation2 + $0xc] sm:$0xe]  ;;  %v1101_v4 = vld [vmem:[#allocation9 + $0x30] sm:$0xff]  ;;  %850 = vmatpush.bf16.msrb.mxu1 %v1118_v6 }
  0x2a   :  { %v173_v19 = vor.u32 %v172_v12, %v169_v11  ;;  %v371_v22 = vunpack.c.l.b16 %v353_v17  ;;  %v356_v29 = vrot.slane %v152_v16, 5  ;;  %v162_v32 = vld [vmem:[#allocation2 + $0x14] sm:$0x1]  ;;  %v194_v36 = vshll.u32 %v151_v20, 16  ;;  %v1080_v48 = vld [vmem:[#allocation2 + $0xc] sm:$0xff]  ;;  %739 = vmatpush.bf16.msrb.mxu0 %v1101_v4  ;;  %1120 = vmatpush.bf16.msrb.mxu2 %v1101_v4  ;;  %v1099_v12 = vld [vmem:[#allocation9 + $0x20] sm:$0xff] }
  0x2b   :  { %v189_v31 = vsel %vm1340_vm15, %v184_v23, %v188_v24  ;;  %v193_v35 = vrot.slane %v191_v25, 4  ;;  %v954_v38 = vrot.slane %v339_v28, 9  ;;  %v202_v39 = vrot.slane %v200_v21, 5  ;;  %v1100_v3 = vld [vmem:[#allocation9 + $0x28] sm:$0xff]  ;;  %v450_v10 = vld [vmem:[#allocation3 + $0x8] sm:$0x1] }
  0x2c   :  { %v174_v27 = vrot.slane %v173_v19, 4  ;;  %v374_v30 = vpack.c.b16 %v371_v22, %v370_v13  ;;  %v224_v34 = vunpack.c.l.b16 %v189_v31  ;;  %v204_v40 = vshrl.u32 %v152_v16, 16  ;;  %v1109_v13 = vld [vmem:[#allocation9 + $0x70] sm:$0xff]  ;;  %v1116_v14 = vld [vmem:[#allocation9 + $0xa8] sm:$0xff]  ;;  %v1098_v15 = vld [vmem:[#allocation9 + $0x18] sm:$0xff] }
  0x2d   :  { %v358_v41 = vrot.slane %v356_v29, 4  ;;  %v359_v42 = vrot.slane %v162_v32, 5  ;;  %v196_v43 = vrot.slane %v194_v36, 5  ;;  %v210_v44 = vshll.u32 %v162_v32, 16  ;;  %851 = vmatpush.bf16.msrb.mxu1 %v1117_v8  ;;  %v1108_v16 = vld [vmem:[#allocation9 + $0x68] sm:$0xff]  ;;  %v1115_v17 = vld [vmem:[#allocation9 + $0xa0] sm:$0xff] }
  0x2e   :  { %v179_v33 = vsel %vm1340_vm15, %v174_v27, %v178_v7  ;;  %971 = vmatmul.msk.bf16.vlgmr.msra.gmra.mxu2 %vm253_vm12, %v374_v30  ;;  %v206_v46 = vrot.slane %v204_v40, 4  ;;  %v357_v50 = vsel %vm1330_vm13, %v954_v38, %v356_v29  ;;  %v444_v5 = vsel %vm1363_vm3, 0, %v443_v1  ;;  %740 = vmatpush.bf16.msrb.mxu0 %v1100_v3  ;;  %v1110_v7 = vld [vmem:[#allocation9 + $0x78] sm:$0xff]  ;;  %v1097_v19 = vld [vmem:[#allocation9 + $0x10] sm:$0xff]  ;;  %v446_v20 = vld [vmem:[#allocation3 + $0xc] sm:$0x1] }
  0x2f   :  { %v223_v37 = vunpack.c.l.b16 %v179_v33  ;;  %v197_v47 = vor.u32 %v196_v43, %v193_v35  ;;  %v360_v51 = vsel %vm1330_vm13, %v358_v41, %v359_v42  ;;  %v212_v53 = vrot.slane %v210_v44, 5  ;;  %445 = vst [vmem:[#allocation3] sm:$0x1] %v444_v5  ;;  %1121 = vmatpush.bf16.msrb.mxu2 %v1100_v3  ;;  %659 = vmatpush.bf16.msra.mxu3 %v1110_v7  ;;  %v1107_v23 = vld [vmem:[#allocation9 + $0x60] sm:$0xff]  ;;  %v1114_v24 = vld [vmem:[#allocation9 + $0x98] sm:$0xff]  ;;  %v1096_v25 = vld [vmem:[#allocation9 + $0x8] sm:$0xff] }
  0x30   :  { %v207_v49 = vor.u32 %v206_v46, %v202_v39  ;;  %v372_v55 = vunpack.c.l.b16 %v357_v50  ;;  %v373_v56 = vunpack.c.l.b16 %v360_v51  ;;  %v451_v11 = vsel %vm1371_vm1, 0, %v450_v10  ;;  %v1106_v28 = vld [vmem:[#allocation9 + $0x58] sm:$0xff]  ;;  %v1113_v29 = vld [vmem:[#allocation9 + $0x90] sm:$0xff]  ;;  %v1095_v30 = vld [vmem:[#allocation9] sm:$0xff] }
  0x31   :  { %v227_v45 = vpack.c.b16 %v224_v34, %v223_v37  ;;  %v198_v52 = vrot.slane %v197_v47, 4  ;;  %452 = vst [vmem:[#allocation3 + $0x8] sm:$0x1] %v451_v11  ;;  %852 = vmatpush.bf16.msrb.mxu1 %v1116_v14  ;;  %v447_v22 = vsel %vm1363_vm3, 0, %v446_v20  ;;  %v1382_v32 = vld [vmem:[%s1432_s3] ss:$0 sm:$0xff] }
  0x32   :  { %v208_v54 = vrot.slane %v207_v49, 4  ;;  %v375_v60 = vpack.c.b16 %v373_v56, %v372_v55  ;;  %741 = vmatpush.bf16.msrb.mxu0 %v1099_v12  ;;  %448 = vst [vmem:[#allocation3 + $0xc] sm:$0x1] %v447_v22  ;;  %v453_v33 = vld [vmem:[#allocation3 + $0x14] sm:$0x1]  ;;  %v1105_v38 = vld [vmem:[#allocation9 + $0x50] sm:$0xff] }
  0x33   :  { %925 = vmatmul.msk.bf16.vlgmr.msra.gmra.mxu0 %vm253_vm12, %v227_v45  ;;  %v203_v57 = vsel %vm1340_vm15, %v198_v52, %v202_v39  ;;  %1122 = vmatpush.bf16.msrb.mxu2 %v1099_v12  ;;  %v454_v35 = vsel %vm1371_vm1, 0, %v453_v33  ;;  %v1112_v39 = vld [vmem:[#allocation9 + $0x88] sm:$0xff]  ;;  %v1111_v44 = vld [vmem:[#allocation9 + $0x80] sm:$0xff] }
  0x34   :  { %952 = vmatmul.msk.bf16.gmra.mxu1 %vm253_vm12, %v1080_v48  ;;  %v213_v58 = vsel %vm1340_vm15, %v208_v54, %v212_v53  ;;  %v225_v61 = vunpack.c.l.b16 %v203_v57  ;;  %660 = vmatpush.bf16.msra.mxu3 %v1109_v13  ;;  %455 = vst [vmem:[#allocation3 + $0x14] sm:$0x1] %v454_v35  ;;  %v1104_v43 = vld [vmem:[#allocation9 + $0x48] sm:$0xff]  ;;  %v1103_v50 = vld [vmem:[#allocation9 + $0x40] sm:$0xff] }
  0x35   :  { %v226_v62 = vunpack.c.l.b16 %v213_v58  ;;  %853 = vmatpush.bf16.msrb.mxu1 %v1115_v17 }
  0x36   :  { %742 = vmatpush.bf16.msrb.mxu0 %v1098_v15  ;;  %v502_v55 = vld [vmem:[#allocation3] sm:$0xf] }
  0x37   :  { %v228_v63 = vpack.c.b16 %v226_v62, %v225_v61  ;;  %1123 = vmatpush.bf16.msrb.mxu2 %v1098_v15 }
  0x38   :  { %661 = vmatpush.bf16.msra.mxu3 %v1108_v16  ;;  %v506_v7 = vld [vmem:[#allocation3 + $0x8] sm:$0x1] }
  0x39   :  { %854 = vmatpush.bf16.msrb.mxu1 %v1114_v24 }
  0x3a   :  { %743 = vmatpush.bf16.msrb.mxu0 %v1097_v19 }
  0x3b   :  { %1124 = vmatpush.bf16.msrb.mxu2 %v1097_v19 }
  0x3c   :  { %662 = vmatpush.bf16.msra.mxu3 %v1107_v23 }
  0x3d   :  { %855 = vmatpush.bf16.msrb.mxu1 %v1113_v29  ;;  %v509_v29 = vld [vmem:[#allocation3 + $0xc] sm:$0xf] }
  0x3e   :  { %972 = vmatmul.msk.bf16.gmra.mxu2 %vm253_vm12, %v375_v60  ;;  %744 = vmatpush.bf16.msrb.mxu0 %v1096_v25 }
  0x3f   :  { %1125 = vmatpush.bf16.msrb.mxu2 %v1096_v25 }
  0x40   :  { %663 = vmatpush.bf16.msra.mxu3 %v1106_v28 }
  0x41   :  { %856 = vmatpush.bf16.msrb.mxu1 %v1112_v39 }
  0x42   :  { %745 = vmatpush.bf16.msrb.mxu0 %v1095_v30 }
  0x43   :  { %926 = vmatmul.msk.bf16.gmra.mxu0 %vm253_vm12, %v228_v63  ;;  %1126 = vmatpush.bf16.msrb.mxu2 %v1095_v30 }
  0x44   :  { %664 = vmatpush.bf16.msra.mxu3 %v1105_v38 }
  0x45   :  { %857 = vmatpush.bf16.msrb.mxu1 %v1111_v44 }
  0x48   :  { %665 = vmatpush.bf16.msra.mxu3 %v1104_v43 }
  0x4c   :  { %666 = vmatpush.bf16.msra.mxu3 %v1103_v50 }
  0xa1   :  { %v328_v21 = vpop.f32.mrf.mxu1 }
  0xa9   :  { %v330_v37 = vpop.f32.mrf.mxu1 }
  0xb0   :  { %v269_v27 = vpop.f32.mrf.mxu0 }
  0xb1   :  { %v329_v31 = vadd.f32 %v328_v21, %v269_v27  ;;  %v415_v34 = vpop.f32.mrf.mxu2  ;;  %v333_v56 = vpop.f32.mrf.mxu1 }
  0xb3   :  { %v425_v36 = vadd.f32 %v415_v34, %v329_v31 }
  0xb5   :  { %v433_v40 = vadd.f32 %v1382_v32, %v425_v36 }
  0xb7   :  { %v437_v41 = vmax.f32 %v433_v40, 0.0 }
  0xb8   :  { %v271_v42 = vpop.f32.mrf.mxu0 }
  0xb9   :  { %v456_v45 = vpack.c.bf16 %v437_v41, %v437_v41  ;;  %v331_v46 = vadd.f32 %v330_v37, %v271_v42  ;;  %v417_v47 = vpop.f32.mrf.mxu2  ;;  %v335_v12 = vpop.f32.mrf.mxu1 }
  0xbb   :  { %v461_v48 = vshrl.u32 %v456_v45, 16  ;;  %v426_v49 = vadd.f32 %v417_v47, %v331_v46  ;;  %v464_v52 = vshll.u32 %v456_v45, 16 }
  0xbd   :  { %v463_v51 = vrot.slane %v461_v48, 7  ;;  %v434_v53 = vadd.f32 %v1382_v32, %v426_v49 }
  0xbf   :  { %v466_v57 = vor.u32 %v464_v52, %v463_v51  ;;  %v438_v58 = vmax.f32 %v434_v53, 0.0  ;;  %v467_v8 = vrot.slane %v463_v51, 4 }
  0xc0   :  { %v274_v60 = vpop.f32.mrf.mxu0 }
  0xc1   :  { %v503_v61 = vsel %vm1389_vm5, %v466_v57, %v502_v55  ;;  %v457_v62 = vpack.c.bf16 %v438_v58, %v438_v58  ;;  %v334_v63 = vadd.f32 %v333_v56, %v274_v60  ;;  %v420_v0 = vpop.f32.mrf.mxu2  ;;  %v513_v55 = vld [vmem:[#allocation3 + $0x14] sm:$0x1] }
  0xc2   :  { %504 = vst [vmem:[#allocation3] sm:$0xf] %v503_v61 }
  0xc3   :  { %v469_v1 = vshrl.u32 %v457_v62, 16  ;;  %v427_v4 = vadd.f32 %v420_v0, %v334_v63  ;;  %v472_v6 = vshll.u32 %v457_v62, 16 }
  0xc5   :  { %v471_v5 = vrot.slane %v469_v1, 7  ;;  %v435_v3 = vadd.f32 %v1382_v32, %v427_v4 }
  0xc7   :  { %v474_v9 = vor.u32 %v472_v6, %v471_v5  ;;  %v476_v10 = vrot.slane %v471_v5, 4  ;;  %v439_v11 = vmax.f32 %v435_v3, 0.0 }
  0xc8   :  { %v276_v13 = vpop.f32.mrf.mxu0 }
  0xc9   :  { %v475_v14 = vsel %vm1304_vm7, %v467_v8, %v474_v9  ;;  %v507_v15 = vsel %vm1363_vm3, %v476_v10, %v506_v7  ;;  %v458_v16 = vpack.c.bf16 %v439_v11, %v439_v11  ;;  %v336_v17 = vadd.f32 %v335_v12, %v276_v13  ;;  %v516_v19 = vld [vmem:[#allocation3] sm:$0xf]  ;;  %v422_v20 = vpop.f32.mrf.mxu2 }
  0xca   :  { %505 = vst [vmem:[#allocation3 + $0x4] sm:$0xf] %v475_v14  ;;  %v539_v21 = vshrl.u32 %v516_v19, 16  ;;  %v542_v22 = vshll.u32 %v516_v19, 16  ;;  %v757_v30 = vld [vmem:[#allocation3] sm:$0xe] }
  0xcb   :  { %508 = vst [vmem:[#allocation3 + $0x8] sm:$0x1] %v507_v15  ;;  %v478_v23 = vshrl.u32 %v458_v16, 16  ;;  %v428_v24 = vadd.f32 %v422_v20, %v336_v17  ;;  %v481_v27 = vshll.u32 %v458_v16, 16  ;;  %v1045_v40 = vrot.slane %v757_v30, 9 }
  0xcc   :  { %v541_v31 = vrot.slane %v539_v21, 4  ;;  %v544_v33 = vrot.slane %v542_v22, 5 }
  0xcd   :  { %v480_v25 = vrot.slane %v478_v23, 7  ;;  %v436_v28 = vadd.f32 %v1382_v32, %v428_v24 }
  0xce   :  { %v545_v43 = vor.u32 %v544_v33, %v541_v31 }
  0xcf   :  { %v483_v34 = vor.u32 %v481_v27, %v480_v25  ;;  %v440_v35 = vmax.f32 %v436_v28, 0.0  ;;  %v484_v54 = vrot.slane %v480_v25, 4 }
  0xd0   :  { %v546_v58 = vrot.slane %v545_v43, 4 }
  0xd1   :  { %v510_v36 = vsel %vm1389_vm5, %v483_v34, %v509_v29  ;;  %v459_v37 = vpack.c.bf16 %v440_v35, %v440_v35  ;;  %v1093_v38 = vld [vmem:[#allocation3] sm:$0xff] }
  0xd2   :  { %v517_v39 = vld [vmem:[#allocation3 + $0x4] sm:$0xf]  ;;  %511 = vst [vmem:[#allocation3 + $0xc] sm:$0xf] %v510_v36  ;;  %v536_v41 = vld [vmem:[#allocation3 + $0x8] sm:$0x1]  ;;  %746 = vmatmul.bf16.vlgmr.msrb.gmra.mxu0 %v1093_v38 }
  0xd3   :  { %v765_v42 = vrot.slane %v517_v39, 5  ;;  %v548_v44 = vshll.u32 %v517_v39, 16  ;;  %v486_v45 = vshrl.u32 %v459_v37, 16  ;;  %v768_v32 = vrot.slane %v536_v41, 5 }
  0xd4   :  { %v552_v46 = vshrl.u32 %v517_v39, 16  ;;  %v558_v50 = vshll.u32 %v536_v41, 16  ;;  %v489_v52 = vshll.u32 %v459_v37, 16 }
  0xd5   :  { %v766_v47 = vsel %vm1330_vm13, %v1045_v40, %v765_v42  ;;  %v767_v48 = vrot.slane %v765_v42, 4  ;;  %v550_v49 = vrot.slane %v548_v44, 5  ;;  %v488_v51 = vrot.slane %v486_v45, 7 }
  0xd6   :  { %v554_v53 = vrot.slane %v552_v46, 4  ;;  %v794_v57 = vunpack.c.l.b16 %v766_v47  ;;  %v560_v1 = vrot.slane %v558_v50, 5  ;;  %v1136_v47 = vld [vmem:[%s1433_s4] ss:$0 sm:$0xff]  ;;  %s1244_s4 = smov [#allocation10]  }
  0xd7   :  { %v769_v56 = vsel %vm1330_vm13, %v767_v48, %v768_v32  ;;  %v491_v60 = vor.u32 %v489_v52, %v488_v51  ;;  %v493_v61 = vrot.slane %v488_v51, 4  ;;  %v551_v0 = vsel %vm1340_vm15, %v546_v58, %v550_v49  ;;  %s893_s10 = sshll.u32 %s1244_s4, 4  ;;  %s894_s10 = int_to_ptr.vmem [resolvable:$true] %s893_s10 }
  0xd8   :  { %v795_v62 = vunpack.c.l.b16 %v769_v56  ;;  %v555_v63 = vor.u32 %v554_v53, %v550_v49  ;;  %v603_v11 = vunpack.c.l.b16 %v551_v0 }
  0xd9   :  { %v492_v4 = vsel %vm1304_vm7, %v484_v54, %v491_v60  ;;  %v514_v5 = vsel %vm1363_vm3, %v493_v61, %v513_v55  ;;  %v518_v7 = vld [vmem:[#allocation3 + $0xc] sm:$0xf] }
  0xda   :  { %v798_v6 = vpack.c.b16 %v795_v62, %v794_v57  ;;  %v556_v3 = vrot.slane %v555_v63, 4  ;;  %512 = vst [vmem:[#allocation3 + $0x10] sm:$0xf] %v492_v4  ;;  %v563_v8 = vshrl.u32 %v518_v7, 16  ;;  %v566_v9 = vshll.u32 %v518_v7, 16 }
  0xdb   :  { %515 = vst [vmem:[#allocation3 + $0x14] sm:$0x1] %v514_v5  ;;  %v758_v14 = vld [vmem:[#allocation3 + $0xc] sm:$0xe] }
  0xdc   :  { %858 = vmatmul.bf16.vlgmr.msrb.gmra.mxu1 %v798_v6  ;;  %v561_v10 = vsel %vm1340_vm15, %v556_v3, %v560_v1  ;;  %v565_v26 = vrot.slane %v563_v8, 4  ;;  %v568_v15 = vrot.slane %v566_v9, 5  ;;  %v1046_v17 = vrot.slane %v758_v14, 9 }
  0xdd   :  { %v604_v12 = vunpack.c.l.b16 %v561_v10 }
  0xde   :  { %v569_v21 = vor.u32 %v568_v15, %v565_v26 }
  0xdf   :  { %v607_v13 = vpack.c.b16 %v604_v12, %v603_v11 }
  0xe0   :  { %v570_v33 = vrot.slane %v569_v21, 4 }
  0xe1   :  { %667 = vmatmul.bf16.vlgmr.msra.gmra.mxu3 %v607_v13  ;;  %v1094_v2 = vld [vmem:[#allocation3 + $0xc] sm:$0xff] }
  0xe2   :  { %v519_v16 = vld [vmem:[#allocation3 + $0x10] sm:$0xf]  ;;  %v537_v19 = vld [vmem:[#allocation3 + $0x14] sm:$0x1]  ;;  %751 = vmatmul.bf16.vlgmr.msrb.gmra.mxu2 %v1094_v2 }
  0xe3   :  { %v772_v20 = vrot.slane %v519_v16, 5  ;;  %v572_v22 = vshll.u32 %v519_v16, 16  ;;  %v576_v23 = vshrl.u32 %v519_v16, 16  ;;  %v775_v24 = vrot.slane %v537_v19, 5 }
  0xe4   :  { %v582_v25 = vshll.u32 %v537_v19, 16 }
  0xe5   :  { %v773_v27 = vsel %vm1330_vm13, %v1046_v17, %v772_v20  ;;  %v774_v28 = vrot.slane %v772_v20, 4  ;;  %v574_v29 = vrot.slane %v572_v22, 5  ;;  %v578_v30 = vrot.slane %v576_v23, 4 }
  0xe6   :  { %v796_v35 = vunpack.c.l.b16 %v773_v27  ;;  %v584_v39 = vrot.slane %v582_v25, 5 }
  0xe7   :  { %v776_v31 = vsel %vm1330_vm13, %v774_v28, %v775_v24  ;;  %v579_v34 = vor.u32 %v578_v30, %v574_v29  ;;  %v575_v37 = vsel %vm1340_vm15, %v570_v33, %v574_v29 }
  0xe8   :  { %v797_v36 = vunpack.c.l.b16 %v776_v31  ;;  %v605_v42 = vunpack.c.l.b16 %v575_v37 }
  0xe9   :  { %v580_v38 = vrot.slane %v579_v34, 4 }
  0xea   :  { %v799_v40 = vpack.c.b16 %v797_v36, %v796_v35 }
  0xeb   :  { %v585_v41 = vsel %vm1340_vm15, %v580_v38, %v584_v39 }
  0xec   :  { %863 = vmatmul.bf16.gmra.mxu1 %v799_v40  ;;  %v606_v43 = vunpack.c.l.b16 %v585_v41 }
  0xee   :  { %v608_v44 = vpack.c.b16 %v606_v43, %v605_v42 }
  0xf1   :  { %672 = vmatmul.bf16.gmra.mxu3 %v608_v44 }
 0x14f   :  { %v747_v45 = vpop.f32.mrf.mxu0 }
 0x157   :  { %v749_v52 = vpop.f32.mrf.mxu0 }
 0x159   :  { %v859_v59 = vpop.f32.mrf.mxu1 }
 0x161   :  { %v861_v50 = vpop.f32.mrf.mxu1 }
 0x164   :  { %v668_v32 = vpop.f32.mrf.mxu3 }
 0x165   :  { %v748_v46 = vadd.f32 %v747_v45, %v668_v32  ;;  %v752_v56 = vpop.f32.mrf.mxu2 }
 0x167   :  { %v869_v48 = vadd.f32 %v859_v59, %v748_v46 }
 0x169   :  { %v877_v49 = vadd.f32 %v1136_v47, %v869_v48  ;;  %v864_v58 = vpop.f32.mrf.mxu1 }
 0x16b   :  { %v881_v51 = vmax.f32 %v877_v49, 0.0 }
 0x16c   :  { %v670_v18 = vpop.f32.mrf.mxu3 }
 0x16d   :  { %885 = vst [vmem:[#allocation10] sm:$0xff] %v881_v51  ;;  %v750_v53 = vadd.f32 %v749_v52, %v670_v18  ;;  %v754_v1 = vpop.f32.mrf.mxu2 }
 0x16f   :  { %v870_v54 = vadd.f32 %v861_v50, %v750_v53 }
 0x171   :  { %v878_v55 = vadd.f32 %v1136_v47, %v870_v54  ;;  %v866_v6 = vpop.f32.mrf.mxu1 }
 0x173   :  { %v882_v57 = vmax.f32 %v878_v55, 0.0 }
 0x174   :  { %v673_v60 = vpop.f32.mrf.mxu3 }
 0x175   :  { %886 = vst [vmem:[#allocation10 + $0x8] sm:$0xff] %v882_v57  ;;  %v753_v61 = vadd.f32 %v752_v56, %v673_v60 }
 0x177   :  { %v871_v62 = vadd.f32 %v864_v58, %v753_v61 }
 0x179   :  { %v879_v63 = vadd.f32 %v1136_v47, %v871_v62 }
 0x17b   :  { %v883_v0 = vmax.f32 %v879_v63, 0.0 }
 0x17c   :  { %v675_v4 = vpop.f32.mrf.mxu3 }
 0x17d   :  { %887 = vst [vmem:[#allocation10 + $0x10] sm:$0xff] %v883_v0  ;;  %v755_v5 = vadd.f32 %v754_v1, %v675_v4 }
 0x17f   :  { %v872_v3 = vadd.f32 %v866_v6, %v755_v5 }
 0x181   :  { %v880_v7 = vadd.f32 %v1136_v47, %v872_v3 }
 0x183   :  { %v884_v8 = vmax.f32 %v880_v7, 0.0 }
 0x185   :  { %888 = vst [vmem:[#allocation10 + $0x18] sm:$0xff] %v884_v8 }
 0x186   :  { %901 = dma.vmem_to_hbm [thread:$0]  %s894_s10, 512, %s896_s13, [#allocation6], %s1245_s14, %s1245_s14, %s1246_s15  }
 0x187   :  { %1237 = dma.done.wait [#allocation6], 512  }
 0x188   :  { %1238 = vsyncadd [#allocation6], 4294966784 }
 0x189   :  { %906 = vsyncpa [#allocation5], 1 }
 0x18a   :  { %907 = vsyncpa [#allocation8], 1 }
 0x18b   :  { %908 = vsyncpa [#allocation6], 1 }

</bundles_post_ra>
